<compile_context>
chip_gen: v6e
topology: v6e:2x2x1
jax: 0.10.0
libtpu: 0.0.40
codegen_flags: <defaults>
</compile_context>

<pallas_src>
import functools

import jax
import jax.numpy as jnp
from jax.experimental import pallas as pl
from jax.experimental.pallas import tpu as pltpu


def _ls_ce_kernel(logits_ref, tgt_ref, out_ref, acc_ref, *, n_rows, n_classes,
                  row_tile, smoothing):
    i = pl.program_id(0)

    @pl.when(i == 0)
    def _():
        acc_ref[...] = jnp.zeros_like(acc_ref)

    # --- hot path: shifted logits + the two row reductions we actually need ---
    x = logits_ref[...].astype(jnp.float32)                    # (tn, C)
    m = jnp.max(x, axis=-1, keepdims=True)                     # (tn, 1)
    shifted = x - m                                            # (tn, C)
    lse = jnp.log(jnp.sum(jnp.exp(shifted), axis=-1, keepdims=True))  # (tn, 1)
    sum_shifted = jnp.sum(shifted, axis=-1, keepdims=True)     # (tn, 1)

    # gather shifted[i, target[i]] via a (1, C) iota vs (tn, 1) target compare
    tgt = tgt_ref[...]                                         # (tn, 1) int32
    cls_idx = jax.lax.broadcasted_iota(jnp.int32, (1, n_classes), 1)
    shifted_t = jnp.sum(jnp.where(cls_idx == tgt, shifted, 0.0),
                        axis=-1, keepdims=True)                # (tn, 1)

    # per-row linearly-combined loss:
    #   smoothing*(loss_i/C) + (1-smoothing)*nll_i
    # = lse - (smoothing/C)*sum_shifted - (1-smoothing)*shifted_t
    contrib = (lse
               - jnp.float32(smoothing / n_classes) * sum_shifted
               - jnp.float32(1.0 - smoothing) * shifted_t)     # (tn, 1)

    # mask out rows past the true batch size (padding)
    row_idx = i * row_tile + jax.lax.broadcasted_iota(jnp.int32, (row_tile, 1), 0)
    contrib = jnp.where(row_idx < n_rows, contrib, 0.0)

    # vectorized accumulation; no per-step reduce-to-scalar
    acc_ref[...] += contrib

    @pl.when(i == pl.num_programs(0) - 1)
    def _():
        out_ref[0] = jnp.sum(acc_ref[...]) / jnp.float32(n_rows)


def _choose_row_tile(n, c, itemsize, sublane):
    # Budget ~16 MiB for the double-buffered logits input stream (safe for
    # v5e/v6e's 128 MiB and v7x's 64 MiB physical VMEM with headroom).
    budget = 16 * 1024 * 1024
    rows = budget // (2 * c * itemsize)
    rows = max(sublane, (rows // sublane) * sublane)
    rows = min(rows, 1024)
    n_aligned = pl.cdiv(n, sublane) * sublane
    return min(rows, n_aligned)


def label_smoothing_cross_entropy(logits, target, *, smoothing=0.1,
                                  reduction="mean", row_tile=None,
                                  vmem_limit_bytes=48 * 1024 * 1024):
    """logits: (N, C) float; target: (N,) int. Returns scalar float32 loss."""
    assert reduction == "mean", "kernel implements the default 'mean' reduction"
    n, c = logits.shape
    itemsize = jnp.dtype(logits.dtype).itemsize
    # sub-32-bit inputs pack along sublanes: bf16 needs a 16-row minimum tile
    sublane = 8 if itemsize >= 4 else (16 if itemsize == 2 else 32)

    if row_tile is None:
        row_tile = _choose_row_tile(n, c, itemsize, sublane)
    assert row_tile % sublane == 0, "row_tile must respect the sublane tiling"

    # pad the batch so the grid covers it; padded rows are masked in-kernel
    n_pad = pl.cdiv(n, row_tile) * row_tile
    if n_pad != n:
        logits = jnp.pad(logits, ((0, n_pad - n), (0, 0)))
        target = jnp.pad(target, ((0, n_pad - n),))
    tgt2d = target.astype(jnp.int32).reshape(n_pad, 1)

    kernel = functools.partial(_ls_ce_kernel, n_rows=n, n_classes=c,
                               row_tile=row_tile, smoothing=float(smoothing))

    cost = pl.CostEstimate(
        flops=6 * n_pad * c,
        transcendentals=n_pad * c,                       # one exp per element
        bytes_accessed=n_pad * c * itemsize + n_pad * 4 + 4,
    )

    out = pl.pallas_call(
        kernel,
        out_shape=jax.ShapeDtypeStruct((1,), jnp.float32),
        grid_spec=pltpu.PrefetchScalarGridSpec(
            num_scalar_prefetch=0,
            grid=(n_pad // row_tile,),
            in_specs=[
                pl.BlockSpec((row_tile, c), lambda i: (i, 0)),   # logits tile
                pl.BlockSpec((row_tile, 1), lambda i: (i, 0)),   # target tile
            ],
            out_specs=pl.BlockSpec(memory_space=pltpu.MemorySpace.SMEM),
            scratch_shapes=[pltpu.VMEM((row_tile, 1), jnp.float32)],
        ),
        compiler_params=pltpu.CompilerParams(
            dimension_semantics=("arbitrary",),          # grid axis is a reduction
            vmem_limit_bytes=vmem_limit_bytes),
        cost_estimate=cost,
    )(logits, tgt2d)
    return out[0]


def _reference(logits, target, smoothing=0.1):
    logp = jax.nn.log_softmax(logits.astype(jnp.float32), axis=-1)
    c = logits.shape[-1]
    loss = jnp.mean(-jnp.sum(logp, axis=-1))
    nll = jnp.mean(-jnp.take_along_axis(logp, target[:, None], axis=-1)[:, 0])
    return smoothing * (loss / c) + (1.0 - smoothing) * nll


if __name__ == "__main__":
    key = jax.random.PRNGKey(0)
    k1, k2 = jax.random.split(key)

    # small shapes consistent with the module: (batch, classes)
    N, C = 16, 32
    logits = jax.random.normal(k1, (N, C), dtype=jnp.float32)
    target = jax.random.randint(k2, (N,), 0, C, dtype=jnp.int32)

    result = label_smoothing_cross_entropy(logits, target, smoothing=0.1)
    result = jax.block_until_ready(result)
    ref = _reference(logits, target, smoothing=0.1)
    assert jnp.allclose(result, ref, atol=1e-5, rtol=1e-5), (result, ref)

    # ragged batch (exercises the padded / masked tail path)
    result2 = label_smoothing_cross_entropy(logits[:13], target[:13],
                                            smoothing=0.1)
    result2 = jax.block_until_ready(result2)
    ref2 = _reference(logits[:13], target[:13], smoothing=0.1)
    assert jnp.allclose(result2, ref2, atol=1e-5, rtol=1e-5), (result2, ref2)

    print("KERNEL_OK")
</pallas_src>

<mosaic_0001>
module attributes {stable_mosaic.version = 11 : i64} {
  func.func @_ls_ce_kernel(%arg0: i32, %arg1: memref<16x32xf32, #tpu.memory_space<vmem>>, %arg2: memref<16x1xi32, #tpu.memory_space<vmem>>, %arg3: memref<1xf32, #tpu.memory_space<smem>>, %arg4: memref<16x1xf32, #tpu.memory_space<vmem>>) attributes {dimension_semantics = [#tpu.dimension_semantics<arbitrary>], iteration_bounds = array<i64: 1>, scalar_prefetch = 0 : i64, scratch_operands = 1 : i64, tpu.core_type = #tpu.core_type<tc>, window_params = [{transform_indices = @transform_0, window_bounds = array<i64: 16, 32>}, {transform_indices = @transform_1, window_bounds = array<i64: 16, 1>}, {transform_indices = @transform_2, window_bounds = array<i64: 1>}]} {
    %c0_i32 = arith.constant 0 : i32
    %0 = arith.cmpi eq, %arg0, %c0_i32 : i32
    %1 = arith.extui %0 : i1 to i32
    %c0_i32_0 = arith.constant 0 : i32
    %2 = arith.cmpi ne, %1, %c0_i32_0 : i32
    scf.if %2 {
      %cst_18 = arith.constant 0.000000e+00 : f32
      %43 = vector.broadcast %cst_18 : f32 to vector<16x1xf32>
      %c0_19 = arith.constant 0 : index
      %c0_20 = arith.constant 0 : index
      %44 = vector.load %arg4[%c0_19, %c0_20] : memref<16x1xf32, #tpu.memory_space<vmem>>, vector<16x1xf32>
      tpu.vector_store %arg4[%c0_19, %c0_20], %43 {strides = array<i32>} : memref<16x1xf32, #tpu.memory_space<vmem>>, vector<16x1xf32>,
    } else {
    }
    %c0 = arith.constant 0 : index
    %c0_1 = arith.constant 0 : index
    %3 = vector.load %arg1[%c0, %c0_1] : memref<16x32xf32, #tpu.memory_space<vmem>>, vector<16x32xf32>
    %cst = arith.constant dense<0xFF800000> : vector<16xf32>
    %4 = vector.multi_reduction <maximumf>, %3, %cst [1] : vector<16x32xf32> to vector<16xf32>
    %5 = vector.shape_cast %4 : vector<16xf32> to vector<16x1xf32>
    %6 = vector.broadcast %5 : vector<16x1xf32> to vector<16x32xf32>
    %7 = arith.subf %3, %6 : vector<16x32xf32>
    %8 = math.exp %7 : vector<16x32xf32>
    %cst_2 = arith.constant dense<0.000000e+00> : vector<16xf32>
    %9 = vector.multi_reduction <add>, %8, %cst_2 [1] : vector<16x32xf32> to vector<16xf32>
    %10 = vector.shape_cast %9 : vector<16xf32> to vector<16x1xf32>
    %11 = math.log %10 : vector<16x1xf32>
    %cst_3 = arith.constant dense<0.000000e+00> : vector<16xf32>
    %12 = vector.multi_reduction <add>, %7, %cst_3 [1] : vector<16x32xf32> to vector<16xf32>
    %13 = vector.shape_cast %12 : vector<16xf32> to vector<16x1xf32>
    %c0_4 = arith.constant 0 : index
    %c0_5 = arith.constant 0 : index
    %14 = vector.load %arg2[%c0_4, %c0_5] : memref<16x1xi32, #tpu.memory_space<vmem>>, vector<16x1xi32>
    %15 = tpu.iota {dimensions = array<i32: 1>} : vector<1x32xi32>
    %16 = vector.broadcast %15 : vector<1x32xi32> to vector<16x32xi32>
    %17 = vector.broadcast %14 : vector<16x1xi32> to vector<16x32xi32>
    %18 = arith.cmpi eq, %16, %17 : vector<16x32xi32>
    %cst_6 = arith.constant 0.000000e+00 : f32
    %19 = vector.broadcast %cst_6 : f32 to vector<16x32xf32>
    %20 = arith.select %18, %7, %19 : vector<16x32xi1>, vector<16x32xf32>
    %cst_7 = arith.constant dense<0.000000e+00> : vector<16xf32>
    %21 = vector.multi_reduction <add>, %20, %cst_7 [1] : vector<16x32xf32> to vector<16xf32>
    %22 = vector.shape_cast %21 : vector<16xf32> to vector<16x1xf32>
    %cst_8 = arith.constant 3.125000e-03 : f32
    %23 = vector.broadcast %cst_8 : f32 to vector<16x1xf32>
    %24 = arith.mulf %23, %13 : vector<16x1xf32>
    %25 = arith.subf %11, %24 : vector<16x1xf32>
    %cst_9 = arith.constant 0.899999976 : f32
    %26 = vector.broadcast %cst_9 : f32 to vector<16x1xf32>
    %27 = arith.mulf %26, %22 : vector<16x1xf32>
    %28 = arith.subf %25, %27 : vector<16x1xf32>
    %c16_i32 = arith.constant 16 : i32
    %29 = arith.muli %arg0, %c16_i32 : i32
    %30 = tpu.iota {dimensions = array<i32: 0>} : vector<16x1xi32>
    %31 = vector.broadcast %29 : i32 to vector<16x1xi32>
    %32 = arith.addi %31, %30 : vector<16x1xi32>
    %c16_i32_10 = arith.constant 16 : i32
    %33 = vector.broadcast %c16_i32_10 : i32 to vector<16x1xi32>
    %34 = arith.cmpi slt, %32, %33 : vector<16x1xi32>
    %cst_11 = arith.constant 0.000000e+00 : f32
    %35 = vector.broadcast %cst_11 : f32 to vector<16x1xf32>
    %36 = arith.select %34, %28, %35 : vector<16x1xi1>, vector<16x1xf32>
    %c0_12 = arith.constant 0 : index
    %c0_13 = arith.constant 0 : index
    %37 = vector.load %arg4[%c0_12, %c0_13] : memref<16x1xf32, #tpu.memory_space<vmem>>, vector<16x1xf32>
    %38 = arith.addf %37, %36 : vector<16x1xf32>
    %c0_14 = arith.constant 0 : index
    %c0_15 = arith.constant 0 : index
    %39 = vector.load %arg4[%c0_14, %c0_15] : memref<16x1xf32, #tpu.memory_space<vmem>>, vector<16x1xf32>
    tpu.vector_store %arg4[%c0_14, %c0_15], %38 {strides = array<i32>} : memref<16x1xf32, #tpu.memory_space<vmem>>, vector<16x1xf32>,
    %c0_i32_16 = arith.constant 0 : i32
    %40 = arith.cmpi eq, %arg0, %c0_i32_16 : i32
    %41 = arith.extui %40 : i1 to i32
    %c0_i32_17 = arith.constant 0 : i32
    %42 = arith.cmpi ne, %41, %c0_i32_17 : i32
    scf.if %42 {
      %c0_18 = arith.constant 0 : index
      %c0_19 = arith.constant 0 : index
      %43 = vector.load %arg4[%c0_18, %c0_19] : memref<16x1xf32, #tpu.memory_space<vmem>>, vector<16x1xf32>
      %44 = vector.shape_cast %43 : vector<16x1xf32> to vector<1x16x1xf32>
      %cst_20 = arith.constant dense<0.000000e+00> : vector<1xf32>
      %45 = vector.multi_reduction <add>, %44, %cst_20 [1, 2] : vector<1x16x1xf32> to vector<1xf32>
      %46 = vector.shape_cast %45 : vector<1xf32> to vector<1x1x1xf32>
      %47 = vector.extract %46[0, 0, 0] : f32 from vector<1x1x1xf32>
      %cst_21 = arith.constant 1.600000e+01 : f32
      %48 = arith.divf %47, %cst_21 : f32
      %c0_22 = arith.constant 0 : index
      %49 = memref.load %arg3[%c0_22] : memref<1xf32, #tpu.memory_space<smem>>
      memref.store %48, %arg3[%c0_22] : memref<1xf32, #tpu.memory_space<smem>>
    } else {
    }
    return
  }
  func.func @transform_0(%arg0: i32) -> (i32, i32) {
    %c0_i32 = arith.constant 0 : i32
    %c0_i32_0 = arith.constant 0 : i32
    return %arg0, %c0_i32 : i32, i32
  }
  func.func @transform_1(%arg0: i32) -> (i32, i32) {
    %c0_i32 = arith.constant 0 : i32
    %c0_i32_0 = arith.constant 0 : i32
    return %arg0, %c0_i32 : i32, i32
  }
  func.func @transform_2(%arg0: i32) -> i32 {
    %c0_i32 = arith.constant 0 : i32
    %c0_i32_0 = arith.constant 0 : i32
    return %c0_i32 : i32
  }
}

</mosaic_0001>

<bundles_post_ra>
// kernel: tpu_custom_call.1
= control target key start
LH: loop header
LB: loop body
LE: loop exit
PB: predicated region body
PF: predicated region fallthrough
CT: control target
= control target key end

     0   :  { %vm21_vm0 = vcmask 261120   ;;  %v156_v4 = vmov 0   ;;  %s203_s0 = inlined_call_operand.vmem [shape: f32[16,32], index: 0, kind: input, shape index: {}]   ;;  %s204_s1 = inlined_call_operand.vmem [shape: s32[16,1], index: 1, kind: input, shape index: {}]   ;;  %s205_s2 = inlined_call_operand.hbm [shape: f32[1], index: 2, kind: output, shape index: {}]  }
   0x1   :  { %v19_v0 = vld [vmem:[%s203_s0] sm:$0xff]  ;;  %v20_v1 = vld [vmem:[%s203_s0 + $0x8] sm:$0xff]  ;;  %136 = vset.pattern.permute.xlu1 %v156_v4  ;;  %137 = vset.pattern.permute.xlu0 %v156_v4 }
   0x2   :  { %v50_v2 = vld [vmem:[%s204_s1] sm:$0xff]  ;;  %v22_v3 = vsel %vm21_vm0, %v19_v0, -inf }
   0x3   :  { %7 = vsyncpa [#allocation4], 0  ;;  %23 = vmax.xlane.f32.xlu0 %v22_v3  ;;  %55 = vperm.xlu1 %136, %v50_v2   ;;  %v25_v5 = vsel %vm21_vm0, %v20_v1, -inf  ;;  %v51_v6 = vld [vmem:[%s204_s1 + $0x8] sm:$0xff]  ;;  %v52_v13 = vlaneseq  ;;  %vm16_vm3 = vcmask 7168   ;;  %v157_v27 = vmov 0.0  }
   0x4   :  { %17 = vst.msk [vmem:[#allocation2] sm:$0xff] %vm16_vm3, %v157_v27  ;;  %18 = vst.msk [vmem:[#allocation2 + $0x8] sm:$0xff] %vm16_vm3, %v157_v27  ;;  %s158_s17 = smov [#allocation3]  }
   0x5   :  { %v53_v17 = vand.u32 127, %v52_v13 }
   0x7   :  { %26 = vmax.xlane.f32.xlu0 %v25_v5  ;;  %58 = vperm.xlu1 %136, %v51_v6  }
   0xb   :  { %v89_v39 = vld [vmem:[#allocation2] sm:$0xff]  ;;  %v90_v47 = vld [vmem:[#allocation2 + $0x8] sm:$0xff] }
  0x7e   :  { %v56_v16 = vpop.permute.xlu1 %55 }
  0x7f   :  { %vm60_vm1 = vcmp.eq.s32.totalorder %v53_v17, %v56_v16 }
  0x82   :  { %v59_v21 = vpop.permute.xlu1 %58 }
  0x83   :  { %vm61_vm2 = vcmp.eq.s32.totalorder %v53_v17, %v59_v21 }
  0x8c   :  { %v24_v7 = vpop.xlane.xlu0 %23 }
  0x8d   :  { %v28_v8 = vsub.f32 %v19_v0, %v24_v7 }
  0x8f   :  { %v30_v9 = vmul.f32 1.442695, %v28_v8  ;;  %v44_v19 = vsel %vm21_vm0, %v28_v8, 0.0  ;;  %v62_v23 = vsel %vm60_vm1, %v28_v8, 0.0 }
  0x90   :  { %v27_v10 = vpop.xlane.xlu0 %26  ;;  %v64_v24 = vsel %vm21_vm0, %v62_v23, 0.0 }
  0x91   :  { %138 = vpow2.f32 %v30_v9  ;;  %v29_v11 = vsub.f32 %v20_v1, %v27_v10 }
  0x93   :  { %v32_v12 = vmul.f32 1.442695, %v29_v11  ;;  %v47_v22 = vsel %vm21_vm0, %v29_v11, 0.0  ;;  %v63_v25 = vsel %vm61_vm2, %v29_v11, 0.0 }
  0x94   :  { %v67_v26 = vsel %vm21_vm0, %v63_v25, 0.0 }
  0x95   :  { %140 = vpow2.f32 %v32_v12 }
  0x9e   :  { %v139_v14 = vpop.eup %138 }
  0x9f   :  { %v34_v15 = vsel %vm21_vm0, %v139_v14, 0.0 }
  0xa0   :  { %35 = vadd.xlane.f32.xlu0 %v34_v15 }
  0xa2   :  { %v141_v18 = vpop.eup %140 }
  0xa3   :  { %v37_v20 = vsel %vm21_vm0, %v141_v18, 0.0 }
  0xa4   :  { %45 = vadd.xlane.f32.xlu0 %v44_v19  ;;  %38 = vadd.xlane.f32.xlu1 %v37_v20 }
  0xa8   :  { %48 = vadd.xlane.f32.xlu0 %v47_v22 }
  0xac   :  { %65 = vadd.xlane.f32.xlu0 %v64_v24 }
  0xb0   :  { %68 = vadd.xlane.f32.xlu0 %v67_v26 }
 0x129   :  { %v36_v28 = vpop.xlane.xlu0 %35 }
 0x12a   :  { %142 = vlog2.f32 %v36_v28 }
 0x12d   :  { %v39_v29 = vpop.xlane.xlu1 %38  ;;  %v46_v30 = vpop.xlane.xlu0 %45 }
 0x12e   :  { %144 = vlog2.f32 %v39_v29  ;;  %v70_v35 = vmul.f32 0.003125, %v46_v30 }
 0x131   :  { %v49_v31 = vpop.xlane.xlu0 %48 }
 0x132   :  { %v71_v42 = vmul.f32 0.003125, %v49_v31 }
 0x135   :  { %v66_v32 = vpop.xlane.xlu0 %65 }
 0x136   :  { %v74_v37 = vmul.f32 0.9, %v66_v32 }
 0x137   :  { %v143_v33 = vpop.eup %142 }
 0x138   :  { %v41_v34 = vmul.f32 0.6931472, %v143_v33 }
 0x139   :  { %v69_v40 = vpop.xlane.xlu0 %68 }
 0x13a   :  { %v72_v36 = vsub.f32 %v41_v34, %v70_v35  ;;  %v75_v46 = vmul.f32 0.9, %v69_v40 }
 0x13b   :  { %v145_v38 = vpop.eup %144 }
 0x13c   :  { %v43_v41 = vmul.f32 0.6931472, %v145_v38  ;;  %v76_v43 = vsub.f32 %v72_v36, %v74_v37 }
 0x13e   :  { %v73_v44 = vsub.f32 %v43_v41, %v71_v42  ;;  %v91_v45 = vadd.f32 %v89_v39, %v76_v43 }
 0x140   :  { %94 = vst.msk [vmem:[#allocation2] sm:$0xff] %vm16_vm3, %v91_v45  ;;  %v77_v48 = vsub.f32 %v73_v44, %v75_v46 }
 0x142   :  { %v92_v49 = vadd.f32 %v90_v47, %v77_v48 }
 0x144   :  { %95 = vst.msk [vmem:[#allocation2 + $0x8] sm:$0xff] %vm16_vm3, %v92_v49 }
 0x147   :  { %v99_v50 = vld [vmem:[#allocation2] sm:$0xff] }
 0x148   :  { %v101_v52 = vsel %vm16_vm3, %v99_v50, 0.0 }
 0x14b   :  { %v100_v51 = vld [vmem:[#allocation2 + $0x8] sm:$0xff] }
 0x14c   :  { %v102_v53 = vsel %vm16_vm3, %v100_v51, 0.0 }
 0x14d   :  { %v103_v54 = vadd.f32 %v102_v53, %v101_v52 }
 0x14f   :  { %104 = vadd.xlane.f32.xlu0 %v103_v54 }
 0x1d8   :  { %v105_v55 = vpop.xlane.xlu0 %104 }
 0x1d9   :  { %v106_v56 = vrot.slane %v105_v55, 4 }
 0x1db   :  { %v107_v57 = vadd.f32 %v106_v56, %v105_v55 }
 0x1dd   :  { %v108_v58 = vrot.slane %v107_v57, 2 }
 0x1df   :  { %v109_v59 = vadd.f32 %v108_v58, %v107_v57 }
 0x1e1   :  { %v110_v60 = vrot.slane %v109_v59, 1 }
 0x1e3   :  { %v111_v61 = vadd.f32 %v110_v60, %v109_v59 }
 0x1e5   :  { %131 = vpush %v111_v61 }
 0x216   :  { %s132_s0 = spop %131 }
 0x217   :  { %s115_s1 = smul.f32 0.0625, %s132_s0 }
 0x219   :  { %117 = sst [smem:[#allocation3]] %s115_s1 }
 0x21a   :  { %125 = dma.smem_to_hbm %s158_s17, 16, %s205_s2, [#allocation4]  }
 0x21b   :  { %154 = dma.done.wait [#allocation4], 16  }
 0x21c   :  { %155 = vsyncadd [#allocation4], 4294967280 }
 0x21d   :  { %129 = sfence }
 0x21e   :  { %130 = vsyncpa [#allocation4], 1 }

</bundles_post_ra>
